<compile_context>
chip_gen: v6e
topology: v6e:2x2x1
jax: 0.10.0
libtpu: 0.0.40
codegen_flags: <defaults>
</compile_context>

<pallas_src>
import jax
import jax.numpy as jnp
from jax.experimental import pallas as pl
from jax.experimental.pallas import tpu as pltpu

F_IN = 784          # real feature width (28*28 MNIST)
TB = 512            # max batch tile (multiple of 8 sublanes / MXU rows)


def _round_up(v, m):
    return ((v + m - 1) // m) * m


def _autoencoder_kernel(
    x_ref,
    # encoder params (W stored pre-transposed as (in, out), bf16; bias f32)
    w1, b1, w2, b2, w3, b3, w4, b4,
    # decoder params
    w5, b5, w6, b6, w7, b7, w8, b8,
    out_ref,
):
    def linear(h, w_ref, b_ref):
        # bf16 operands into the MXU, f32 accumulation, f32 bias add.
        y = jnp.dot(h.astype(jnp.bfloat16), w_ref[...],
                    preferred_element_type=jnp.float32)
        return y + b_ref[...]

    h = x_ref[...]                               # (tb, 784) f32

    # ---- encoder ----
    h = jnp.maximum(linear(h, w1, b1), 0.0)      # (tb, 128) f32
    h = jnp.maximum(linear(h, w2, b2), 0.0)      # (tb, 128) (64 real + zeros)
    h = jnp.maximum(linear(h, w3, b3), 0.0)      # (tb, 128) (12 real + zeros)
    h = linear(h, w4, b4)                        # (tb, 128) latent (3 real)

    # ---- decoder ----
    h = jnp.maximum(linear(h, w5, b5), 0.0)      # (tb, 128) (12 real)
    h = jnp.maximum(linear(h, w6, b6), 0.0)      # (tb, 128) (64 real)
    h = jnp.maximum(linear(h, w7, b7), 0.0)      # (tb, 128)
    h = jnp.tanh(linear(h, w8, b8))              # (tb, 784)

    out_ref[...] = h.astype(out_ref.dtype)       # bf16 store (halves HBM write)


def autoencoder_forward(x, params, *, tb_max=TB):
    """x: (B, 784) float32. params: flat list [w1,b1,...,w8,b8], W as (in,out), f32.

    Returns the reconstruction in bfloat16 (tanh output, values in [-1, 1])."""
    B, F = x.shape
    assert F == F_IN

    # ---- adaptive batch tile ----
    b8 = _round_up(B, 8)
    tb = min(tb_max, b8)
    if b8 // tb < 2 and b8 >= 16:
        # split into (at least) 2 grid steps so v7x's second TensorCore is used
        tb = _round_up((b8 + 1) // 2, 8)
    B_pad = _round_up(B, tb)

    # Only pad the batch dim when needed (no feature-dim pad / dtype-cast pass).
    x_in = x if B_pad == B else jnp.pad(x, ((0, B_pad - B), (0, 0)))

    # ---- pad / cast params ----
    # Narrow inner dims (64/12/3) are zero-padded to 128: padded weight rows
    # multiply zero activations and padded output cols get zero weight + zero
    # bias, so the result is exactly unchanged.  First in-dim (784) and last
    # out-dim (784) are kept at their real width.
    kparams = []
    for i in range(8):
        w = params[2 * i]
        b = params[2 * i + 1]
        fi, fo = w.shape
        fi_p = fi if fi >= 128 else 128
        fo_p = fo if fo >= 128 else 128
        if (fi_p, fo_p) != (fi, fo):
            w = jnp.pad(w, ((0, fi_p - fi), (0, fo_p - fo)))
            b = jnp.pad(b, ((0, 0), (0, fo_p - fo)))
        kparams.append(w.astype(jnp.bfloat16))   # MXU operand dtype
        kparams.append(b.astype(jnp.float32))    # bias add stays f32

    grid = (B_pad // tb,)
    x_spec = pl.BlockSpec((tb, F_IN), lambda i: (i, 0))
    # Full-array blocks with a constant index_map: DMA'd once, resident in VMEM.
    param_specs = [pl.BlockSpec(p.shape, lambda i: (0, 0)) for p in kparams]
    out_spec = pl.BlockSpec((tb, F_IN), lambda i: (i, 0))

    out_p = pl.pallas_call(
        _autoencoder_kernel,
        out_shape=jax.ShapeDtypeStruct((B_pad, F_IN), jnp.bfloat16),
        grid_spec=pltpu.PrefetchScalarGridSpec(
            num_scalar_prefetch=0,
            grid=grid,
            in_specs=[x_spec] + param_specs,
            out_specs=out_spec,
        ),
        compiler_params=pltpu.CompilerParams(
            dimension_semantics=("parallel",),
            vmem_limit_bytes=32 * 1024 * 1024,
        ),
    )(x_in, *kparams)

    return out_p if B_pad == B else out_p[:B]


def init_params(key):
    """Deterministic init mimicking PyTorch nn.Linear (uniform ±1/sqrt(fan_in)).

    Returns weights already transposed to (in_features, out_features), f32."""
    layer_dims = [
        (784, 128), (128, 64), (64, 12), (12, 3),    # encoder
        (3, 12), (12, 64), (64, 128), (128, 784),    # decoder
    ]
    params = []
    for (fan_in, fan_out) in layer_dims:
        key, kw, kb = jax.random.split(key, 3)
        bound = 1.0 / jnp.sqrt(fan_in)
        w = jax.random.uniform(kw, (fan_in, fan_out), jnp.float32, -bound, bound)
        b = jax.random.uniform(kb, (1, fan_out), jnp.float32, -bound, bound)
        params.extend([w, b])
    return params


def reference_forward(x, params):
    """Plain-JAX f32 reference for a sanity check."""
    h = x
    acts = [jax.nn.relu] * 3 + [lambda v: v] + [jax.nn.relu] * 3 + [jnp.tanh]
    for i, act in enumerate(acts):
        w, b = params[2 * i], params[2 * i + 1]
        h = act(h @ w + b)
    return h


# TODO(synk): training loop / MNIST data pipeline / Adam / MSELoss from the
# original module are host-side and not part of the forward pass; not ported.

if __name__ == "__main__":
    key = jax.random.PRNGKey(0)
    key, kx = jax.random.split(key)

    B = 4
    # MNIST images flattened to 784 and normalized to roughly [-1, 1]
    x = jax.random.uniform(kx, (B, 784), jnp.float32, -1.0, 1.0)

    params = init_params(key)

    out = jax.block_until_ready(autoencoder_forward(x, params))
    ref = reference_forward(x, params)

    assert out.shape == (B, 784)
    # bf16 MXU operands + bf16 output -> relaxed tolerance vs. f32 reference.
    assert jnp.allclose(out.astype(jnp.float32), ref, atol=5e-2, rtol=0.0), \
        "mismatch vs reference"

    print("KERNEL_OK")
</pallas_src>

<mosaic_0001>
module attributes {stable_mosaic.version = 11 : i64} {
  func.func @_autoencoder_kernel(%arg0: i32, %arg1: memref<8x784xf32, #tpu.memory_space<vmem>>, %arg2: memref<784x128xbf16, #tpu.memory_space<vmem>>, %arg3: memref<1x128xf32, #tpu.memory_space<vmem>>, %arg4: memref<128x128xbf16, #tpu.memory_space<vmem>>, %arg5: memref<1x128xf32, #tpu.memory_space<vmem>>, %arg6: memref<128x128xbf16, #tpu.memory_space<vmem>>, %arg7: memref<1x128xf32, #tpu.memory_space<vmem>>, %arg8: memref<128x128xbf16, #tpu.memory_space<vmem>>, %arg9: memref<1x128xf32, #tpu.memory_space<vmem>>, %arg10: memref<128x128xbf16, #tpu.memory_space<vmem>>, %arg11: memref<1x128xf32, #tpu.memory_space<vmem>>, %arg12: memref<128x128xbf16, #tpu.memory_space<vmem>>, %arg13: memref<1x128xf32, #tpu.memory_space<vmem>>, %arg14: memref<128x128xbf16, #tpu.memory_space<vmem>>, %arg15: memref<1x128xf32, #tpu.memory_space<vmem>>, %arg16: memref<128x784xbf16, #tpu.memory_space<vmem>>, %arg17: memref<1x784xf32, #tpu.memory_space<vmem>>, %arg18: memref<8x784xbf16, #tpu.memory_space<vmem>>) attributes {dimension_semantics = [#tpu.dimension_semantics<parallel>], iteration_bounds = array<i64: 1>, scalar_prefetch = 0 : i64, scratch_operands = 0 : i64, tpu.core_type = #tpu.core_type<tc>, window_params = [{transform_indices = @transform_0, window_bounds = array<i64: 8, 784>}, {pipeline_mode = #tpu.pipeline_mode<synchronous>, transform_indices = @transform_1, window_bounds = array<i64: 784, 128>}, {pipeline_mode = #tpu.pipeline_mode<synchronous>, transform_indices = @transform_2, window_bounds = array<i64: 1, 128>}, {pipeline_mode = #tpu.pipeline_mode<synchronous>, transform_indices = @transform_3, window_bounds = array<i64: 128, 128>}, {pipeline_mode = #tpu.pipeline_mode<synchronous>, transform_indices = @transform_4, window_bounds = array<i64: 1, 128>}, {pipeline_mode = #tpu.pipeline_mode<synchronous>, transform_indices = @transform_5, window_bounds = array<i64: 128, 128>}, {pipeline_mode = #tpu.pipeline_mode<synchronous>, transform_indices = @transform_6, window_bounds = array<i64: 1, 128>}, {pipeline_mode = #tpu.pipeline_mode<synchronous>, transform_indices = @transform_7, window_bounds = array<i64: 128, 128>}, {pipeline_mode = #tpu.pipeline_mode<synchronous>, transform_indices = @transform_8, window_bounds = array<i64: 1, 128>}, {pipeline_mode = #tpu.pipeline_mode<synchronous>, transform_indices = @transform_9, window_bounds = array<i64: 128, 128>}, {pipeline_mode = #tpu.pipeline_mode<synchronous>, transform_indices = @transform_10, window_bounds = array<i64: 1, 128>}, {pipeline_mode = #tpu.pipeline_mode<synchronous>, transform_indices = @transform_11, window_bounds = array<i64: 128, 128>}, {pipeline_mode = #tpu.pipeline_mode<synchronous>, transform_indices = @transform_12, window_bounds = array<i64: 1, 128>}, {pipeline_mode = #tpu.pipeline_mode<synchronous>, transform_indices = @transform_13, window_bounds = array<i64: 128, 128>}, {pipeline_mode = #tpu.pipeline_mode<synchronous>, transform_indices = @transform_14, window_bounds = array<i64: 1, 128>}, {pipeline_mode = #tpu.pipeline_mode<synchronous>, transform_indices = @transform_15, window_bounds = array<i64: 128, 784>}, {pipeline_mode = #tpu.pipeline_mode<synchronous>, transform_indices = @transform_16, window_bounds = array<i64: 1, 784>}, {transform_indices = @transform_17, window_bounds = array<i64: 8, 784>}]} {
    %c0 = arith.constant 0 : index
    %c0_0 = arith.constant 0 : index
    %0 = vector.load %arg1[%c0, %c0_0] : memref<8x784xf32, #tpu.memory_space<vmem>>, vector<8x784xf32>
    %1 = arith.truncf %0 : vector<8x784xf32> to vector<8x784xbf16>
    %c0_1 = arith.constant 0 : index
    %c0_2 = arith.constant 0 : index
    %2 = vector.load %arg2[%c0_1, %c0_2] : memref<784x128xbf16, #tpu.memory_space<vmem>>, vector<784x128xbf16>
    %cst = arith.constant dense<0.000000e+00> : vector<8x128xf32>
    %3 = tpu.matmul %1, %2, %cst {dimension_numbers = #tpu.dot_dimension_numbers<[1], [0], [0], [1], [0, 0, 1, 1], [], []>} : vector<8x784xbf16>, vector<784x128xbf16>, vector<8x128xf32> -> vector<8x128xf32>
    %c0_3 = arith.constant 0 : index
    %c0_4 = arith.constant 0 : index
    %4 = vector.load %arg3[%c0_3, %c0_4] : memref<1x128xf32, #tpu.memory_space<vmem>>, vector<1x128xf32>
    %5 = vector.broadcast %4 : vector<1x128xf32> to vector<8x128xf32>
    %6 = arith.addf %3, %5 : vector<8x128xf32>
    %cst_5 = arith.constant 0.000000e+00 : f32
    %7 = vector.broadcast %cst_5 : f32 to vector<8x128xf32>
    %8 = arith.maximumf %6, %7 : vector<8x128xf32>
    %9 = arith.truncf %8 : vector<8x128xf32> to vector<8x128xbf16>
    %c0_6 = arith.constant 0 : index
    %c0_7 = arith.constant 0 : index
    %10 = vector.load %arg4[%c0_6, %c0_7] : memref<128x128xbf16, #tpu.memory_space<vmem>>, vector<128x128xbf16>
    %cst_8 = arith.constant dense<0.000000e+00> : vector<8x128xf32>
    %11 = tpu.matmul %9, %10, %cst_8 {dimension_numbers = #tpu.dot_dimension_numbers<[1], [0], [0], [1], [0, 0, 1, 1], [], []>} : vector<8x128xbf16>, vector<128x128xbf16>, vector<8x128xf32> -> vector<8x128xf32>
    %c0_9 = arith.constant 0 : index
    %c0_10 = arith.constant 0 : index
    %12 = vector.load %arg5[%c0_9, %c0_10] : memref<1x128xf32, #tpu.memory_space<vmem>>, vector<1x128xf32>
    %13 = vector.broadcast %12 : vector<1x128xf32> to vector<8x128xf32>
    %14 = arith.addf %11, %13 : vector<8x128xf32>
    %cst_11 = arith.constant 0.000000e+00 : f32
    %15 = vector.broadcast %cst_11 : f32 to vector<8x128xf32>
    %16 = arith.maximumf %14, %15 : vector<8x128xf32>
    %17 = arith.truncf %16 : vector<8x128xf32> to vector<8x128xbf16>
    %c0_12 = arith.constant 0 : index
    %c0_13 = arith.constant 0 : index
    %18 = vector.load %arg6[%c0_12, %c0_13] : memref<128x128xbf16, #tpu.memory_space<vmem>>, vector<128x128xbf16>
    %cst_14 = arith.constant dense<0.000000e+00> : vector<8x128xf32>
    %19 = tpu.matmul %17, %18, %cst_14 {dimension_numbers = #tpu.dot_dimension_numbers<[1], [0], [0], [1], [0, 0, 1, 1], [], []>} : vector<8x128xbf16>, vector<128x128xbf16>, vector<8x128xf32> -> vector<8x128xf32>
    %c0_15 = arith.constant 0 : index
    %c0_16 = arith.constant 0 : index
    %20 = vector.load %arg7[%c0_15, %c0_16] : memref<1x128xf32, #tpu.memory_space<vmem>>, vector<1x128xf32>
    %21 = vector.broadcast %20 : vector<1x128xf32> to vector<8x128xf32>
    %22 = arith.addf %19, %21 : vector<8x128xf32>
    %cst_17 = arith.constant 0.000000e+00 : f32
    %23 = vector.broadcast %cst_17 : f32 to vector<8x128xf32>
    %24 = arith.maximumf %22, %23 : vector<8x128xf32>
    %25 = arith.truncf %24 : vector<8x128xf32> to vector<8x128xbf16>
    %c0_18 = arith.constant 0 : index
    %c0_19 = arith.constant 0 : index
    %26 = vector.load %arg8[%c0_18, %c0_19] : memref<128x128xbf16, #tpu.memory_space<vmem>>, vector<128x128xbf16>
    %cst_20 = arith.constant dense<0.000000e+00> : vector<8x128xf32>
    %27 = tpu.matmul %25, %26, %cst_20 {dimension_numbers = #tpu.dot_dimension_numbers<[1], [0], [0], [1], [0, 0, 1, 1], [], []>} : vector<8x128xbf16>, vector<128x128xbf16>, vector<8x128xf32> -> vector<8x128xf32>
    %c0_21 = arith.constant 0 : index
    %c0_22 = arith.constant 0 : index
    %28 = vector.load %arg9[%c0_21, %c0_22] : memref<1x128xf32, #tpu.memory_space<vmem>>, vector<1x128xf32>
    %29 = vector.broadcast %28 : vector<1x128xf32> to vector<8x128xf32>
    %30 = arith.addf %27, %29 : vector<8x128xf32>
    %31 = arith.truncf %30 : vector<8x128xf32> to vector<8x128xbf16>
    %c0_23 = arith.constant 0 : index
    %c0_24 = arith.constant 0 : index
    %32 = vector.load %arg10[%c0_23, %c0_24] : memref<128x128xbf16, #tpu.memory_space<vmem>>, vector<128x128xbf16>
    %cst_25 = arith.constant dense<0.000000e+00> : vector<8x128xf32>
    %33 = tpu.matmul %31, %32, %cst_25 {dimension_numbers = #tpu.dot_dimension_numbers<[1], [0], [0], [1], [0, 0, 1, 1], [], []>} : vector<8x128xbf16>, vector<128x128xbf16>, vector<8x128xf32> -> vector<8x128xf32>
    %c0_26 = arith.constant 0 : index
    %c0_27 = arith.constant 0 : index
    %34 = vector.load %arg11[%c0_26, %c0_27] : memref<1x128xf32, #tpu.memory_space<vmem>>, vector<1x128xf32>
    %35 = vector.broadcast %34 : vector<1x128xf32> to vector<8x128xf32>
    %36 = arith.addf %33, %35 : vector<8x128xf32>
    %cst_28 = arith.constant 0.000000e+00 : f32
    %37 = vector.broadcast %cst_28 : f32 to vector<8x128xf32>
    %38 = arith.maximumf %36, %37 : vector<8x128xf32>
    %39 = arith.truncf %38 : vector<8x128xf32> to vector<8x128xbf16>
    %c0_29 = arith.constant 0 : index
    %c0_30 = arith.constant 0 : index
    %40 = vector.load %arg12[%c0_29, %c0_30] : memref<128x128xbf16, #tpu.memory_space<vmem>>, vector<128x128xbf16>
    %cst_31 = arith.constant dense<0.000000e+00> : vector<8x128xf32>
    %41 = tpu.matmul %39, %40, %cst_31 {dimension_numbers = #tpu.dot_dimension_numbers<[1], [0], [0], [1], [0, 0, 1, 1], [], []>} : vector<8x128xbf16>, vector<128x128xbf16>, vector<8x128xf32> -> vector<8x128xf32>
    %c0_32 = arith.constant 0 : index
    %c0_33 = arith.constant 0 : index
    %42 = vector.load %arg13[%c0_32, %c0_33] : memref<1x128xf32, #tpu.memory_space<vmem>>, vector<1x128xf32>
    %43 = vector.broadcast %42 : vector<1x128xf32> to vector<8x128xf32>
    %44 = arith.addf %41, %43 : vector<8x128xf32>
    %cst_34 = arith.constant 0.000000e+00 : f32
    %45 = vector.broadcast %cst_34 : f32 to vector<8x128xf32>
    %46 = arith.maximumf %44, %45 : vector<8x128xf32>
    %47 = arith.truncf %46 : vector<8x128xf32> to vector<8x128xbf16>
    %c0_35 = arith.constant 0 : index
    %c0_36 = arith.constant 0 : index
    %48 = vector.load %arg14[%c0_35, %c0_36] : memref<128x128xbf16, #tpu.memory_space<vmem>>, vector<128x128xbf16>
    %cst_37 = arith.constant dense<0.000000e+00> : vector<8x128xf32>
    %49 = tpu.matmul %47, %48, %cst_37 {dimension_numbers = #tpu.dot_dimension_numbers<[1], [0], [0], [1], [0, 0, 1, 1], [], []>} : vector<8x128xbf16>, vector<128x128xbf16>, vector<8x128xf32> -> vector<8x128xf32>
    %c0_38 = arith.constant 0 : index
    %c0_39 = arith.constant 0 : index
    %50 = vector.load %arg15[%c0_38, %c0_39] : memref<1x128xf32, #tpu.memory_space<vmem>>, vector<1x128xf32>
    %51 = vector.broadcast %50 : vector<1x128xf32> to vector<8x128xf32>
    %52 = arith.addf %49, %51 : vector<8x128xf32>
    %cst_40 = arith.constant 0.000000e+00 : f32
    %53 = vector.broadcast %cst_40 : f32 to vector<8x128xf32>
    %54 = arith.maximumf %52, %53 : vector<8x128xf32>
    %55 = arith.truncf %54 : vector<8x128xf32> to vector<8x128xbf16>
    %c0_41 = arith.constant 0 : index
    %c0_42 = arith.constant 0 : index
    %56 = vector.load %arg16[%c0_41, %c0_42] : memref<128x784xbf16, #tpu.memory_space<vmem>>, vector<128x784xbf16>
    %cst_43 = arith.constant dense<0.000000e+00> : vector<8x784xf32>
    %57 = tpu.matmul %55, %56, %cst_43 {dimension_numbers = #tpu.dot_dimension_numbers<[1], [0], [0], [1], [0, 0, 1, 1], [], []>} : vector<8x128xbf16>, vector<128x784xbf16>, vector<8x784xf32> -> vector<8x784xf32>
    %c0_44 = arith.constant 0 : index
    %c0_45 = arith.constant 0 : index
    %58 = vector.load %arg17[%c0_44, %c0_45] : memref<1x784xf32, #tpu.memory_space<vmem>>, vector<1x784xf32>
    %59 = vector.broadcast %58 : vector<1x784xf32> to vector<8x784xf32>
    %60 = arith.addf %57, %59 : vector<8x784xf32>
    %61 = math.tanh %60 : vector<8x784xf32>
    %62 = arith.truncf %61 : vector<8x784xf32> to vector<8x784xbf16>
    %c0_46 = arith.constant 0 : index
    %c0_47 = arith.constant 0 : index
    %63 = vector.load %arg18[%c0_46, %c0_47] : memref<8x784xbf16, #tpu.memory_space<vmem>>, vector<8x784xbf16>
    tpu.vector_store %arg18[%c0_46, %c0_47], %62 {strides = array<i32>} : memref<8x784xbf16, #tpu.memory_space<vmem>>, vector<8x784xbf16>,
    return
  }
  func.func @transform_0(%arg0: i32) -> (i32, i32) {
    %c0_i32 = arith.constant 0 : i32
    %c0_i32_0 = arith.constant 0 : i32
    return %arg0, %c0_i32 : i32, i32
  }
  func.func @transform_1(%arg0: i32) -> (i32, i32) {
    %c0_i32 = arith.constant 0 : i32
    %c0_i32_0 = arith.constant 0 : i32
    %c0_i32_1 = arith.constant 0 : i32
    return %c0_i32, %c0_i32_0 : i32, i32
  }
  func.func @transform_2(%arg0: i32) -> (i32, i32) {
    %c0_i32 = arith.constant 0 : i32
    %c0_i32_0 = arith.constant 0 : i32
    %c0_i32_1 = arith.constant 0 : i32
    return %c0_i32, %c0_i32_0 : i32, i32
  }
  func.func @transform_3(%arg0: i32) -> (i32, i32) {
    %c0_i32 = arith.constant 0 : i32
    %c0_i32_0 = arith.constant 0 : i32
    %c0_i32_1 = arith.constant 0 : i32
    return %c0_i32, %c0_i32_0 : i32, i32
  }
  func.func @transform_4(%arg0: i32) -> (i32, i32) {
    %c0_i32 = arith.constant 0 : i32
    %c0_i32_0 = arith.constant 0 : i32
    %c0_i32_1 = arith.constant 0 : i32
    return %c0_i32, %c0_i32_0 : i32, i32
  }
  func.func @transform_5(%arg0: i32) -> (i32, i32) {
    %c0_i32 = arith.constant 0 : i32
    %c0_i32_0 = arith.constant 0 : i32
    %c0_i32_1 = arith.constant 0 : i32
    return %c0_i32, %c0_i32_0 : i32, i32
  }
  func.func @transform_6(%arg0: i32) -> (i32, i32) {
    %c0_i32 = arith.constant 0 : i32
    %c0_i32_0 = arith.constant 0 : i32
    %c0_i32_1 = arith.constant 0 : i32
    return %c0_i32, %c0_i32_0 : i32, i32
  }
  func.func @transform_7(%arg0: i32) -> (i32, i32) {
    %c0_i32 = arith.constant 0 : i32
    %c0_i32_0 = arith.constant 0 : i32
    %c0_i32_1 = arith.constant 0 : i32
    return %c0_i32, %c0_i32_0 : i32, i32
  }
  func.func @transform_8(%arg0: i32) -> (i32, i32) {
    %c0_i32 = arith.constant 0 : i32
    %c0_i32_0 = arith.constant 0 : i32
    %c0_i32_1 = arith.constant 0 : i32
    return %c0_i32, %c0_i32_0 : i32, i32
  }
  func.func @transform_9(%arg0: i32) -> (i32, i32) {
    %c0_i32 = arith.constant 0 : i32
    %c0_i32_0 = arith.constant 0 : i32
    %c0_i32_1 = arith.constant 0 : i32
    return %c0_i32, %c0_i32_0 : i32, i32
  }
  func.func @transform_10(%arg0: i32) -> (i32, i32) {
    %c0_i32 = arith.constant 0 : i32
    %c0_i32_0 = arith.constant 0 : i32
    %c0_i32_1 = arith.constant 0 : i32
    return %c0_i32, %c0_i32_0 : i32, i32
  }
  func.func @transform_11(%arg0: i32) -> (i32, i32) {
    %c0_i32 = arith.constant 0 : i32
    %c0_i32_0 = arith.constant 0 : i32
    %c0_i32_1 = arith.constant 0 : i32
    return %c0_i32, %c0_i32_0 : i32, i32
  }
  func.func @transform_12(%arg0: i32) -> (i32, i32) {
    %c0_i32 = arith.constant 0 : i32
    %c0_i32_0 = arith.constant 0 : i32
    %c0_i32_1 = arith.constant 0 : i32
    return %c0_i32, %c0_i32_0 : i32, i32
  }
  func.func @transform_13(%arg0: i32) -> (i32, i32) {
    %c0_i32 = arith.constant 0 : i32
    %c0_i32_0 = arith.constant 0 : i32
    %c0_i32_1 = arith.constant 0 : i32
    return %c0_i32, %c0_i32_0 : i32, i32
  }
  func.func @transform_14(%arg0: i32) -> (i32, i32) {
    %c0_i32 = arith.constant 0 : i32
    %c0_i32_0 = arith.constant 0 : i32
    %c0_i32_1 = arith.constant 0 : i32
    return %c0_i32, %c0_i32_0 : i32, i32
  }
  func.func @transform_15(%arg0: i32) -> (i32, i32) {
    %c0_i32 = arith.constant 0 : i32
    %c0_i32_0 = arith.constant 0 : i32
    %c0_i32_1 = arith.constant 0 : i32
    return %c0_i32, %c0_i32_0 : i32, i32
  }
  func.func @transform_16(%arg0: i32) -> (i32, i32) {
    %c0_i32 = arith.constant 0 : i32
    %c0_i32_0 = arith.constant 0 : i32
    %c0_i32_1 = arith.constant 0 : i32
    return %c0_i32, %c0_i32_0 : i32, i32
  }
  func.func @transform_17(%arg0: i32) -> (i32, i32) {
    %c0_i32 = arith.constant 0 : i32
    %c0_i32_0 = arith.constant 0 : i32
    return %arg0, %c0_i32 : i32, i32
  }
}

</mosaic_0001>

<bundles_post_ra>
// kernel: tpu_custom_call.1
= control target key start
LH: loop header
LB: loop body
LE: loop exit
PB: predicated region body
PF: predicated region fallthrough
CT: control target
= control target key end

     0   :  { %s3295_s0 = inlined_call_operand.vmem [shape: f32[8,784], index: 0, kind: input, shape index: {}]   ;;  %s3296_s1 = inlined_call_operand.vmem [shape: bf16[784,128], index: 1, kind: input, shape index: {}]   ;;  %s3297_s2 = inlined_call_operand.vmem [shape: f32[1,128], index: 2, kind: input, shape index: {}]   ;;  %s3298_s3 = inlined_call_operand.vmem [shape: bf16[128,128], index: 3, kind: input, shape index: {}]   ;;  %s3299_s4 = inlined_call_operand.hbm [shape: f32[1,128], index: 4, kind: input, shape index: {}]   ;;  %s3300_s5 = inlined_call_operand.vmem [shape: bf16[128,128], index: 5, kind: input, shape index: {}]   ;;  %s3301_s6 = inlined_call_operand.vmem [shape: f32[1,128], index: 6, kind: input, shape index: {}]   ;;  %s3302_s7 = inlined_call_operand.vmem [shape: bf16[128,128], index: 7, kind: input, shape index: {}]   ;;  %s3303_s8 = inlined_call_operand.vmem [shape: f32[1,128], index: 8, kind: input, shape index: {}]   ;;  %s3304_s9 = inlined_call_operand.vmem [shape: bf16[128,128], index: 9, kind: input, shape index: {}]   ;;  %s3305_s10 = inlined_call_operand.vmem [shape: f32[1,128], index: 10, kind: input, shape index: {}]   ;;  %s3306_s11 = inlined_call_operand.vmem [shape: bf16[128,128], index: 11, kind: input, shape index: {}]   ;;  %s3307_s12 = inlined_call_operand.vmem [shape: f32[1,128], index: 12, kind: input, shape index: {}]   ;;  %s3308_s13 = inlined_call_operand.vmem [shape: bf16[128,128], index: 13, kind: input, shape index: {}]   ;;  %s3309_s14 = inlined_call_operand.vmem [shape: f32[1,128], index: 14, kind: input, shape index: {}]   ;;  %s3310_s15 = inlined_call_operand.vmem [shape: bf16[128,784], index: 15, kind: input, shape index: {}]   ;;  %s3311_s16 = inlined_call_operand.vmem [shape: f32[1,784], index: 16, kind: input, shape index: {}]   ;;  %s3312_s17 = inlined_call_operand.hbm [shape: bf16[8,784], index: 17, kind: output, shape index: {}]  }
   0x1   :  { %3315 = sst [smem:[#allocation8_spill]] %s3295_s0 }
   0x2   :  { %3316 = sst [smem:[#allocation9_spill]] %s3296_s1 }
   0x3   :  { %22 = vsyncpa [#allocation3], 0 }
   0x4   :  { %23 = vsyncpa [#allocation4], 0  ;;  %s2620_s24 = smov [#allocation2]  }
   0x5   :  { %s38_s25 = sshll.u32 %s2620_s24, 4  ;;  %s39_s25 = int_to_ptr.vmem [resolvable:$true] %s38_s25 }
   0x6   :  { %s2584_s26 = scalar_lea.vmem %s39_s25, 16  ;;  %s2588_s27 = scalar_lea.vmem %s39_s25, 32 }
   0x7   :  { %p2585_p0 = scmp.ne.s32.totalorder %s39_s25, %s2584_s26  ;;  %p2589_p1 = scmp.lt.s32.totalorder %s39_s25, %s39_s25 }
   0x8   :  { %p2590_p2 = scmp.lt.s32.totalorder %s2588_s27, %s2584_s26 }
   0xa   :  { %p2591_p3 = por %p2590_p2, %p2589_p1 }
   0xc   :  { %p2592_p4 = pnand %p2591_p3, %p2585_p0 }
   0xe   :  { %2595 = shalt.err (!%p2592_p4)
}
   0xf   :  { %41 = dma.hbm_to_vmem [thread:$0]  %s3299_s4, 16, %s39_s25, [#allocation3]  }
  0x10   :  { %2616 = dma.done.wait [#allocation3], 16  }
  0x11   :  { %2617 = vsyncadd [#allocation3], 4294967280  ;;  %s3317_s18 = sld [smem:[#allocation9_spill]]  ;;  %v2621_v44 = vmov 0.0   ;;  %vm2622_vm0 = vmmov 0   ;;  %vm483_vm1 = vcmask 130048  }
  0x12   :  { %s3318_s20 = sld [smem:[#allocation8_spill]]  ;;  %vm1917_vm2 = vcmask 125952  }
  0x17   :  { %v2385_v0 = vld [vmem:[%s3317_s18 + $0x78] sm:$0xff]   ;;  %v2389_v4 = vld [vmem:[%s3317_s18 + $0x70] sm:$0xff]   ;;  %v2393_v8 = vld [vmem:[%s3317_s18 + $0x68] sm:$0xff]  }
  0x18   :  { %v2386_v1 = vld [vmem:[%s3317_s18 + $0x38] sm:$0xff]   ;;  %2103 = vmatprep.subr.bf16.mxu0 %v2385_v0  ;;  %v2390_v5 = vld [vmem:[%s3317_s18 + $0x30] sm:$0xff]   ;;  %v2394_v9 = vld [vmem:[%s3317_s18 + $0x28] sm:$0xff]  }
  0x19   :  { %v2387_v2 = vld [vmem:[%s3317_s18 + $0xf8] sm:$0xff]   ;;  %2104 = vmatpush3.bf16.msra.mxu0 %v2386_v1  ;;  %v2391_v6 = vld [vmem:[%s3317_s18 + $0xf0] sm:$0xff]   ;;  %v2395_v10 = vld [vmem:[%s3317_s18 + $0xe8] sm:$0xff]  }
  0x1a   :  { %v2388_v3 = vld [vmem:[%s3317_s18 + $0xb8] sm:$0xff]   ;;  %2125 = vmatprep.subr.bf16.mxu1 %v2387_v2  ;;  %2105 = vmatprep.subr.bf16.mxu0 %v2389_v4  ;;  %v2392_v7 = vld [vmem:[%s3317_s18 + $0xb0] sm:$0xff]   ;;  %v2396_v11 = vld [vmem:[%s3317_s18 + $0xa8] sm:$0xff]  }
  0x1b   :  { %2126 = vmatpush3.bf16.msra.mxu1 %v2388_v3  ;;  %v2397_v12 = vld [vmem:[%s3317_s18 + $0x60] sm:$0xff]   ;;  %v2401_v16 = vld [vmem:[%s3317_s18 + $0x58] sm:$0xff]   ;;  %v2405_v20 = vld [vmem:[%s3317_s18 + $0x50] sm:$0xff]  }
  0x1c   :  { %2127 = vmatprep.subr.bf16.mxu1 %v2391_v6  ;;  %v2398_v13 = vld [vmem:[%s3317_s18 + $0x20] sm:$0xff]   ;;  %v2402_v17 = vld [vmem:[%s3317_s18 + $0x18] sm:$0xff]   ;;  %v2406_v21 = vld [vmem:[%s3317_s18 + $0x10] sm:$0xff]  }
  0x1d   :  { %2106 = vmatpush3.bf16.msra.mxu0 %v2390_v5  ;;  %v2399_v14 = vld [vmem:[%s3317_s18 + $0xe0] sm:$0xff]   ;;  %v2403_v18 = vld [vmem:[%s3317_s18 + $0xd8] sm:$0xff]   ;;  %v2407_v22 = vld [vmem:[%s3317_s18 + $0xd0] sm:$0xff]  }
  0x1e   :  { %2107 = vmatprep.subr.bf16.mxu0 %v2393_v8  ;;  %v2400_v15 = vld [vmem:[%s3317_s18 + $0xa0] sm:$0xff]   ;;  %v2404_v19 = vld [vmem:[%s3317_s18 + $0x98] sm:$0xff]   ;;  %v2408_v23 = vld [vmem:[%s3317_s18 + $0x90] sm:$0xff]  }
  0x1f   :  { %2128 = vmatpush3.bf16.msra.mxu1 %v2392_v7  ;;  %v2409_v24 = vld [vmem:[%s3317_s18 + $0x48] sm:$0xff]   ;;  %v2413_v28 = vld [vmem:[%s3317_s18 + $0x40] sm:$0xff]   ;;  %v2417_v36 = vld [vmem:[%s3317_s18 + $0x178] sm:$0xff]  }
  0x20   :  { %2129 = vmatprep.subr.bf16.mxu1 %v2395_v10  ;;  %v2410_v25 = vld [vmem:[%s3317_s18 + $0x8] sm:$0xff]   ;;  %v2414_v29 = vld [vmem:[%s3317_s18] sm:$0xff]   ;;  %v73_v37 = vld [vmem:[%s3318_s20 + $0x18] sm:$0xff] }
  0x21   :  { %2108 = vmatpush3.bf16.msra.mxu0 %v2394_v9  ;;  %v2411_v26 = vld [vmem:[%s3317_s18 + $0xc8] sm:$0xff]   ;;  %v2415_v30 = vld [vmem:[%s3317_s18 + $0xc0] sm:$0xff]   ;;  %v80_v38 = vpack.c.bf16 %v73_v37, %v73_v37  ;;  %v2418_v39 = vld [vmem:[%s3317_s18 + $0x138] sm:$0xff]  }
  0x22   :  { %2109 = vmatprep.subr.bf16.mxu0 %v2397_v12  ;;  %v2412_v27 = vld [vmem:[%s3317_s18 + $0x88] sm:$0xff]   ;;  %v2416_v33 = vld [vmem:[%s3317_s18 + $0x80] sm:$0xff]   ;;  %v72_v40 = vld [vmem:[%s3318_s20 + $0x10] sm:$0xff] }
  0x23   :  { %2130 = vmatpush3.bf16.msra.mxu1 %v2396_v11  ;;  %v71_v31 = vld [vmem:[%s3318_s20 + $0x8] sm:$0xff]  ;;  %v70_v34 = vld [vmem:[%s3318_s20] sm:$0xff]  ;;  %559 = vmatprep.mubr.bf16.mxu1 %v80_v38  ;;  %v79_v41 = vpack.c.bf16 %v72_v40, %v72_v40  ;;  %v2419_v42 = vld [vmem:[%s3317_s18 + $0x170] sm:$0xff]  }
  0x24   :  { %2131 = vmatprep.subr.bf16.mxu1 %v2399_v14  ;;  %v78_v32 = vpack.c.bf16 %v71_v31, %v71_v31  ;;  %v77_v35 = vpack.c.bf16 %v70_v34, %v70_v34  ;;  %v2420_v43 = vld [vmem:[%s3317_s18 + $0x130] sm:$0xff]   ;;  %v2421_v45 = vld [vmem:[%s3317_s18 + $0x168] sm:$0xff]   ;;  %v2423_v47 = vld [vmem:[%s3317_s18 + $0x160] sm:$0xff]  }
  0x25   :  { %2110 = vmatpush3.bf16.msra.mxu0 %v2398_v13  ;;  %v2422_v46 = vld [vmem:[%s3317_s18 + $0x128] sm:$0xff]   ;;  %v2424_v48 = vld [vmem:[%s3317_s18 + $0x120] sm:$0xff]   ;;  %v2425_v49 = vld [vmem:[%s3317_s18 + $0x158] sm:$0xff]  }
  0x26   :  { %2111 = vmatprep.subr.bf16.mxu0 %v2401_v16  ;;  %519 = vmatprep.mubr.bf16.mxu0 %v78_v32  ;;  %v2426_v50 = vld [vmem:[%s3317_s18 + $0x118] sm:$0xff]   ;;  %v2427_v51 = vld [vmem:[%s3317_s18 + $0x150] sm:$0xff]   ;;  %v2433_v53 = vld [vmem:[%s3317_s18 + $0x180] sm:$0xff]  }
  0x27   :  { %2132 = vmatpush3.bf16.msra.mxu1 %v2400_v15  ;;  %v2428_v52 = vld [vmem:[%s3317_s18 + $0x110] sm:$0xff]   ;;  %v75_v54 = vld [vmem:[%s3318_s20 + $0x28] sm:$0xff]  ;;  %v2431_v60 = vld [vmem:[%s3317_s18 + $0x140] sm:$0xff]  }
  0x28   :  { %2133 = vmatprep.subr.bf16.mxu1 %v2403_v18  ;;  %v2429_v55 = vld [vmem:[%s3317_s18 + $0x148] sm:$0xff]   ;;  %v82_v56 = vpack.c.bf16 %v75_v54, %v75_v54  ;;  %v76_v57 = vld [vmem:[%s3318_s20 + $0x30] sm:$0xff]  ;;  %v2432_v61 = vld [vmem:[%s3317_s18 + $0x100] sm:$0xff]  }
  0x29   :  { %2112 = vmatpush3.bf16.msra.mxu0 %v2402_v17  ;;  %v83_v58 = vpack.c.bf16 %v76_v57, %v76_v57  ;;  %v2430_v59 = vld [vmem:[%s3317_s18 + $0x108] sm:$0xff]   ;;  %v74_v62 = vld [vmem:[%s3318_s20 + $0x20] sm:$0xff]  ;;  %v2434_v0 = vld [vmem:[%s3298_s3 + $0x38] sm:$0xff]  }
  0x2a   :  { %2113 = vmatprep.subr.bf16.mxu0 %v2405_v20  ;;  %v81_v63 = vpack.c.bf16 %v74_v62, %v74_v62  ;;  %v2435_v1 = vld [vmem:[%s3298_s3 + $0x30] sm:$0xff]   ;;  %v2436_v2 = vld [vmem:[%s3298_s3 + $0x28] sm:$0xff]   ;;  %v2437_v3 = vld [vmem:[%s3298_s3 + $0x20] sm:$0xff]  }
  0x2b   :  { %2134 = vmatpush3.bf16.msra.mxu1 %v2404_v19  ;;  %v2438_v4 = vld [vmem:[%s3298_s3 + $0x18] sm:$0xff]   ;;  %v2439_v5 = vld [vmem:[%s3298_s3 + $0x10] sm:$0xff]   ;;  %v2440_v6 = vld [vmem:[%s3298_s3 + $0x8] sm:$0xff]  }
  0x2c   :  { %2135 = vmatprep.subr.bf16.mxu1 %v2407_v22  ;;  %v2441_v7 = vld [vmem:[%s3298_s3] sm:$0xff]   ;;  %v2442_v8 = vld [vmem:[%s3300_s5 + $0x38] sm:$0xff]   ;;  %v2443_v9 = vld [vmem:[%s3300_s5 + $0x30] sm:$0xff]  }
  0x2d   :  { %2114 = vmatpush3.bf16.msra.mxu0 %v2406_v21  ;;  %v2444_v10 = vld [vmem:[%s3300_s5 + $0x28] sm:$0xff]   ;;  %v2445_v11 = vld [vmem:[%s3300_s5 + $0x20] sm:$0xff]   ;;  %v2446_v12 = vld [vmem:[%s3300_s5 + $0x18] sm:$0xff]  }
  0x2e   :  { %2115 = vmatprep.subr.bf16.mxu0 %v2409_v24  ;;  %v2447_v13 = vld [vmem:[%s3300_s5 + $0x10] sm:$0xff]   ;;  %v2448_v40 = vld [vmem:[%s3300_s5 + $0x8] sm:$0xff]   ;;  %v2461_v62 = vld [vmem:[%s3304_s9 + $0x20] sm:$0xff]  }
  0x2f   :  { %2136 = vmatpush3.bf16.msra.mxu1 %v2408_v23  ;;  %v2456_v57 = vld [vmem:[%s3302_s7 + $0x8] sm:$0xff]  }
  0x30   :  { %2137 = vmatprep.subr.bf16.mxu1 %v2411_v26 }
  0x31   :  { %2116 = vmatpush3.bf16.msra.mxu0 %v2410_v25 }
  0x32   :  { %2117 = vmatprep.subr.bf16.mxu0 %v2413_v28 }
  0x33   :  { %2138 = vmatpush3.bf16.msra.mxu1 %v2412_v27  ;;  %v1934_v27 = vld [vmem:[%s3297_s2] ss:$0 sm:$0xff] }
  0x34   :  { %2139 = vmatprep.subr.bf16.mxu1 %v2415_v30 }
  0x35   :  { %2118 = vmatpush3.bf16.msra.mxu0 %v2414_v29 }
  0x36   :  { %2147 = vmatprep.subr.bf16.mxu0 %v2417_v36 }
  0x37   :  { %2140 = vmatpush3.bf16.msra.mxu1 %v2416_v33 }
  0x38   :  { %520 = vmatmul.mubr.bf16.vlgmr.msra.gmra.mxu0 %v77_v35  ;;  %2234 = vmatprep.subr.bf16.mxu1 %v2621_v44 }
  0x39   :  { %2148 = vmatpush3.bf16.msra.mxu0 %v2418_v39  ;;  %599 = vmatprep.mubr.bf16.mxu0 %v82_v56 }
  0x3a   :  { %560 = vmatmul.mubr.bf16.vlgmr.msra.gmra.mxu1 %v79_v41  ;;  %2149 = vmatprep.subr.bf16.mxu0 %v2419_v42  ;;  %v2449_v41 = vld [vmem:[%s3300_s5] sm:$0xff]   ;;  %v2450_v42 = vld [vmem:[%s3302_s7 + $0x38] sm:$0xff]  }
  0x3b   :  { %2236 = vmatprep.mubr.msk.bf16.mxu1 %vm2622_vm0, %v2621_v44  ;;  %2235 = vmatpush3.bf16.msra.mxu1 %v2433_v53 }
  0x3c   :  { %2240 = vmatprep.subr.bf16.mxu1 %v2621_v44 }
  0x3d   :  { %2150 = vmatpush3.bf16.msra.mxu0 %v2420_v43  ;;  %v2451_v43 = vld [vmem:[%s3302_s7 + $0x30] sm:$0xff]  }
  0x3e   :  { %2151 = vmatprep.subr.bf16.mxu0 %v2421_v45  ;;  %v2452_v45 = vld [vmem:[%s3302_s7 + $0x28] sm:$0xff]  }
  0x41   :  { %2152 = vmatpush3.bf16.msra.mxu0 %v2422_v46  ;;  %v2453_v46 = vld [vmem:[%s3302_s7 + $0x20] sm:$0xff]  }
  0x42   :  { %2153 = vmatprep.subr.bf16.mxu0 %v2423_v47  ;;  %2237 = vmatmul.mubr.msk.bf16.vlgmr.msra.gmra.mxu1 %vm483_vm1, %v83_v58  ;;  %v2454_v47 = vld [vmem:[%s3302_s7 + $0x18] sm:$0xff]   ;;  %v2457_v58 = vld [vmem:[%s3302_s7] sm:$0xff]  }
  0x43   :  { %2256 = vmatprep.mubr.msk.bf16.mxu1 %vm2622_vm0, %v2621_v44  ;;  %2241 = vmatpush3.bf16.msra.mxu1 %v2434_v0  ;;  %v2463_v0 = vld [vmem:[%s3304_s9 + $0x10] sm:$0xff]  }
  0x44   :  { %2242 = vmatprep.subr.bf16.mxu1 %v2621_v44 }
  0x45   :  { %2154 = vmatpush3.bf16.msra.mxu0 %v2424_v48  ;;  %v2455_v48 = vld [vmem:[%s3302_s7 + $0x10] sm:$0xff]  }
  0x46   :  { %2155 = vmatprep.subr.bf16.mxu0 %v2425_v49  ;;  %v1985_v49 = vld [vmem:[#allocation2] ss:$0 sm:$0xff] }
  0x47   :  { %2243 = vmatpush3.bf16.msra.mxu1 %v2435_v1  ;;  %v2464_v1 = vld [vmem:[%s3304_s9 + $0x8] sm:$0xff]  }
  0x48   :  { %2244 = vmatprep.subr.bf16.mxu1 %v2621_v44 }
  0x49   :  { %2156 = vmatpush3.bf16.msra.mxu0 %v2426_v50 }
  0x4a   :  { %2157 = vmatprep.subr.bf16.mxu0 %v2427_v51 }
  0x4b   :  { %2245 = vmatpush3.bf16.msra.mxu1 %v2436_v2  ;;  %v1994_v2 = vld [vmem:[%s3301_s6] ss:$0 sm:$0xff] }
  0x4c   :  { %2246 = vmatprep.subr.bf16.mxu1 %v2621_v44 }
  0x4d   :  { %2158 = vmatpush3.bf16.msra.mxu0 %v2428_v52 }
  0x4e   :  { %2159 = vmatprep.subr.bf16.mxu0 %v2429_v55 }
  0x4f   :  { %2247 = vmatpush3.bf16.msra.mxu1 %v2437_v3 }
  0x50   :  { %2248 = vmatprep.subr.bf16.mxu1 %v2621_v44 }
  0x51   :  { %2160 = vmatpush3.bf16.msra.mxu0 %v2430_v59  ;;  %v2458_v59 = vld [vmem:[%s3304_s9 + $0x38] sm:$0xff]  }
  0x52   :  { %2161 = vmatprep.subr.bf16.mxu0 %v2431_v60  ;;  %v2459_v60 = vld [vmem:[%s3304_s9 + $0x30] sm:$0xff]  }
  0x53   :  { %2249 = vmatpush3.bf16.msra.mxu1 %v2438_v4 }
  0x54   :  { %2250 = vmatprep.subr.bf16.mxu1 %v2621_v44 }
  0x55   :  { %2162 = vmatpush3.bf16.msra.mxu0 %v2432_v61  ;;  %v2460_v61 = vld [vmem:[%s3304_s9 + $0x28] sm:$0xff]  }
  0x56   :  { %2260 = vmatprep.subr.bf16.mxu0 %v2621_v44 }
  0x57   :  { %2251 = vmatpush3.bf16.msra.mxu1 %v2439_v5 }
  0x58   :  { %600 = vmatmul.mubr.bf16.vlgmr.msra.gmra.mxu0 %v81_v63  ;;  %2252 = vmatprep.subr.bf16.mxu1 %v2621_v44  ;;  %v2462_v63 = vld [vmem:[%s3304_s9 + $0x18] sm:$0xff]  }
  0x59   :  { %2276 = vmatprep.mubr.msk.bf16.mxu0 %vm2622_vm0, %v2621_v44  ;;  %2261 = vmatpush3.bf16.msra.mxu0 %v2442_v8 }
  0x5a   :  { %2262 = vmatprep.subr.bf16.mxu0 %v2621_v44 }
  0x5b   :  { %2253 = vmatpush3.bf16.msra.mxu1 %v2440_v6 }
  0x5c   :  { %2254 = vmatprep.subr.bf16.mxu1 %v2621_v44 }
  0x5d   :  { %2263 = vmatpush3.bf16.msra.mxu0 %v2443_v9 }
  0x5e   :  { %2264 = vmatprep.subr.bf16.mxu0 %v2621_v44 }
  0x5f   :  { %2255 = vmatpush3.bf16.msra.mxu1 %v2441_v7 }
  0x60   :  { %2280 = vmatprep.subr.bf16.mxu1 %v2621_v44 }
  0x61   :  { %2265 = vmatpush3.bf16.msra.mxu0 %v2444_v10  ;;  %v2465_v10 = vld [vmem:[%s3304_s9] sm:$0xff]  }
  0x62   :  { %2266 = vmatprep.subr.bf16.mxu0 %v2621_v44 }
  0x65   :  { %2267 = vmatpush3.bf16.msra.mxu0 %v2445_v11  ;;  %v2466_v11 = vld [vmem:[%s3306_s11 + $0x38] sm:$0xff]  }
  0x66   :  { %2268 = vmatprep.subr.bf16.mxu0 %v2621_v44 }
  0x69   :  { %2269 = vmatpush3.bf16.msra.mxu0 %v2446_v12  ;;  %v2467_v12 = vld [vmem:[%s3306_s11 + $0x30] sm:$0xff]  }
  0x6a   :  { %2270 = vmatprep.subr.bf16.mxu0 %v2621_v44 }
  0x6d   :  { %2271 = vmatpush3.bf16.msra.mxu0 %v2447_v13  ;;  %v2468_v13 = vld [vmem:[%s3306_s11 + $0x28] sm:$0xff]  }
  0x6e   :  { %2272 = vmatprep.subr.bf16.mxu0 %v2621_v44 }
  0x71   :  { %2273 = vmatpush3.bf16.msra.mxu0 %v2448_v40  ;;  %v2480_v40 = vld [vmem:[%s3308_s13 + $0x8] sm:$0xff]  }
  0x72   :  { %2274 = vmatprep.subr.bf16.mxu0 %v2621_v44 }
  0x75   :  { %2275 = vmatpush3.bf16.msra.mxu0 %v2449_v41  ;;  %v2481_v41 = vld [vmem:[%s3308_s13] sm:$0xff]  }
  0x76   :  { %2300 = vmatprep.subr.bf16.mxu0 %v2621_v44 }
  0xf8   :  { %v2119_v14 = vpop.f32.mrf.mxu0 }
  0xfa   :  { %v2120_v15 = vpop.f32.mrf.mxu0  ;;  %v2141_v16 = vpop.f32.mrf.mxu1 }
  0xfb   :  { %v2121_v26 = vadd.f32 %v2120_v15, %v2119_v14  ;;  %v2469_v14 = vld [vmem:[%s3306_s11 + $0x20] sm:$0xff]   ;;  %v2470_v15 = vld [vmem:[%s3306_s11 + $0x18] sm:$0xff]  }
  0xfc   :  { %v2122_v17 = vpop.f32.mrf.mxu0  ;;  %v2142_v18 = vpop.f32.mrf.mxu1 }
  0xfd   :  { %v522_v28 = vadd.f32 %v2121_v26, %v1934_v27  ;;  %v2143_v29 = vadd.f32 %v2142_v18, %v2141_v16  ;;  %v2471_v16 = vld [vmem:[%s3306_s11 + $0x10] sm:$0xff]   ;;  %v2003_v17 = vld [vmem:[%s3303_s8] ss:$0 sm:$0xff]  ;;  %v2474_v26 = vld [vmem:[%s3308_s13 + $0x38] sm:$0xff]  }
  0xfe   :  { %v2123_v19 = vpop.f32.mrf.mxu0  ;;  %v2144_v20 = vpop.f32.mrf.mxu1  ;;  %v2475_v27 = vld [vmem:[%s3308_s13 + $0x30] sm:$0xff]  }
  0xff   :  { %v562_v32 = vadd.f32 %v2143_v29, %v522_v28  ;;  %v2476_v28 = vld [vmem:[%s3308_s13 + $0x28] sm:$0xff]   ;;  %v2477_v29 = vld [vmem:[%s3308_s13 + $0x20] sm:$0xff]  }
 0x100   :  { %v2145_v21 = vpop.f32.mrf.mxu1 }
 0x102   :  { %v641_v22 = vpop.f32.mrf.mxu1 }
 0x104   :  { %v2238_v23 = vpop.f32.mrf.mxu1 }
 0x106   :  { %v644_v24 = vpop.f32.mrf.mxu1 }
 0x107   :  { %v2472_v24 = vld [vmem:[%s3306_s11 + $0x8] sm:$0xff]  }
 0x108   :  { %v2239_v25 = vpop.f32.mrf.mxu1 }
 0x109   :  { %v2473_v25 = vld [vmem:[%s3306_s11] sm:$0xff]  }
 0x118   :  { %v2163_v30 = vpop.f32.mrf.mxu0 }
 0x11a   :  { %v2164_v31 = vpop.f32.mrf.mxu0 }
 0x11b   :  { %v2165_v33 = vadd.f32 %v2164_v31, %v2163_v30  ;;  %v2478_v30 = vld [vmem:[%s3308_s13 + $0x18] sm:$0xff]   ;;  %v2479_v31 = vld [vmem:[%s3308_s13 + $0x10] sm:$0xff]  }
 0x11c   :  { %v2166_v34 = vpop.f32.mrf.mxu0 }
 0x11d   :  { %v602_v35 = vadd.f32 %v2165_v33, %v562_v32  ;;  %v2012_v32 = vld [vmem:[%s3305_s10] ss:$0 sm:$0xff] }
 0x11e   :  { %v2167_v36 = vpop.f32.mrf.mxu0 }
 0x11f   :  { %v642_v37 = vadd.f32 %v641_v22, %v602_v35 }
 0x121   :  { %v647_v38 = vmax.f32 %v642_v37, 0.0 }
 0x123   :  { %v648_v39 = vpack.c.bf16 %v647_v38, %v647_v38 }
 0x125   :  { %2257 = vmatmul.mubr.bf16.vlgmr.msra.gmra.mxu1 %v648_v39 }
 0x126   :  { %2296 = vmatprep.mubr.msk.bf16.mxu1 %vm2622_vm0, %v2621_v44  ;;  %2281 = vmatpush3.bf16.msra.mxu1 %v2450_v42  ;;  %v2482_v42 = vld [vmem:[%s3310_s15 + $0x188] ss:$28 sps:$4 sm:$0xff]  }
 0x127   :  { %2282 = vmatprep.subr.bf16.mxu1 %v2621_v44 }
 0x12a   :  { %2283 = vmatpush3.bf16.msra.mxu1 %v2451_v43  ;;  %v2484_v43 = vld [vmem:[%s3310_s15 + $0x18c] ss:$28 sps:$4 sm:$0xff]  }
 0x12b   :  { %2284 = vmatprep.subr.bf16.mxu1 %v2621_v44 }
 0x12e   :  { %2285 = vmatpush3.bf16.msra.mxu1 %v2452_v45  ;;  %v2487_v45 = vld [vmem:[%s3310_s15 + $0x194] ss:$28 sps:$4 sm:$0xff]  }
 0x12f   :  { %2286 = vmatprep.subr.bf16.mxu1 %v2621_v44 }
 0x132   :  { %2287 = vmatpush3.bf16.msra.mxu1 %v2453_v46  ;;  %v2490_v46 = vld [vmem:[%s3310_s15 + $0x154] ss:$28 sps:$4 sm:$0xff]  }
 0x133   :  { %2288 = vmatprep.subr.bf16.mxu1 %v2621_v44 }
 0x136   :  { %2289 = vmatpush3.bf16.msra.mxu1 %v2454_v47  ;;  %v2488_v47 = vld [vmem:[%s3310_s15 + $0x150] ss:$28 sps:$4 sm:$0xff]  }
 0x137   :  { %2290 = vmatprep.subr.bf16.mxu1 %v2621_v44 }
 0x13a   :  { %2291 = vmatpush3.bf16.msra.mxu1 %v2455_v48  ;;  %v2496_v48 = vld [vmem:[%s3310_s15 + $0x11c] ss:$28 sps:$4 sm:$0xff]  }
 0x13b   :  { %2292 = vmatprep.subr.bf16.mxu1 %v2621_v44 }
 0x13e   :  { %2293 = vmatpush3.bf16.msra.mxu1 %v2456_v57  ;;  %v2518_v57 = vld [vmem:[%s3310_s15 + $0x38] ss:$28 sps:$4 sm:$0xff]  }
 0x13f   :  { %2294 = vmatprep.subr.bf16.mxu1 %v2621_v44 }
 0x142   :  { %2295 = vmatpush3.bf16.msra.mxu1 %v2457_v58  ;;  %v2021_v58 = vld [vmem:[%s3307_s12] ss:$0 sm:$0xff] }
 0x143   :  { %2320 = vmatprep.subr.bf16.mxu1 %v2621_v44 }
 0x1e5   :  { %v754_v50 = vpop.f32.mrf.mxu1 }
 0x1e6   :  { %v755_v51 = vadd.f32 %v1985_v49, %v754_v50  ;;  %v2494_v49 = vld [vmem:[%s3310_s15 + $0x118] ss:$28 sps:$4 sm:$0xff]   ;;  %v2502_v50 = vld [vmem:[%s3310_s15 + $0xe4] ss:$28 sps:$4 sm:$0xff]  }
 0x1e7   :  { %v2258_v52 = vpop.f32.mrf.mxu1 }
 0x1e8   :  { %v760_v53 = vmax.f32 %v755_v51, 0.0  ;;  %v2500_v51 = vld [vmem:[%s3310_s15 + $0xe0] ss:$28 sps:$4 sm:$0xff]   ;;  %v2508_v52 = vld [vmem:[%s3310_s15 + $0xac] ss:$28 sps:$4 sm:$0xff]  }
 0x1e9   :  { %v757_v54 = vpop.f32.mrf.mxu1 }
 0x1ea   :  { %v761_v55 = vpack.c.bf16 %v760_v53, %v760_v53  ;;  %v2506_v53 = vld [vmem:[%s3310_s15 + $0xa8] ss:$28 sps:$4 sm:$0xff]   ;;  %v2514_v54 = vld [vmem:[%s3310_s15 + $0x74] ss:$28 sps:$4 sm:$0xff]  }
 0x1eb   :  { %v2259_v56 = vpop.f32.mrf.mxu1 }
 0x1ec   :  { %2277 = vmatmul.mubr.bf16.vlgmr.msra.gmra.mxu0 %v761_v55  ;;  %v2512_v55 = vld [vmem:[%s3310_s15 + $0x70] ss:$28 sps:$4 sm:$0xff]   ;;  %v2520_v56 = vld [vmem:[%s3310_s15 + $0x3c] ss:$28 sps:$4 sm:$0xff]  }
 0x1ed   :  { %2316 = vmatprep.mubr.msk.bf16.mxu0 %vm2622_vm0, %v2621_v44  ;;  %2301 = vmatpush3.bf16.msra.mxu0 %v2458_v59 }
 0x1ee   :  { %2302 = vmatprep.subr.bf16.mxu0 %v2621_v44 }
 0x1f1   :  { %2303 = vmatpush3.bf16.msra.mxu0 %v2459_v60 }
 0x1f2   :  { %2304 = vmatprep.subr.bf16.mxu0 %v2621_v44 }
 0x1f5   :  { %2305 = vmatpush3.bf16.msra.mxu0 %v2460_v61 }
 0x1f6   :  { %2306 = vmatprep.subr.bf16.mxu0 %v2621_v44 }
 0x1f9   :  { %2307 = vmatpush3.bf16.msra.mxu0 %v2461_v62 }
 0x1fa   :  { %2308 = vmatprep.subr.bf16.mxu0 %v2621_v44 }
 0x1fd   :  { %2309 = vmatpush3.bf16.msra.mxu0 %v2462_v63 }
 0x1fe   :  { %2310 = vmatprep.subr.bf16.mxu0 %v2621_v44 }
 0x201   :  { %2311 = vmatpush3.bf16.msra.mxu0 %v2463_v0  ;;  %v2485_v0 = vld [vmem:[%s3310_s15 + $0x190] ss:$28 sps:$4 sm:$0xff]  }
 0x202   :  { %2312 = vmatprep.subr.bf16.mxu0 %v2621_v44 }
 0x205   :  { %2313 = vmatpush3.bf16.msra.mxu0 %v2464_v1 }
 0x206   :  { %2314 = vmatprep.subr.bf16.mxu0 %v2621_v44 }
 0x209   :  { %2315 = vmatpush3.bf16.msra.mxu0 %v2465_v10  ;;  %v2509_v10 = vld [vmem:[%s3310_s15 + $0xb0] ss:$28 sps:$4 sm:$0xff]  }
 0x20a   :  { %2340 = vmatprep.subr.bf16.mxu0 %v2621_v44 }
 0x2ac   :  { %v867_v3 = vpop.f32.mrf.mxu0 }
 0x2ad   :  { %v868_v4 = vadd.f32 %v1994_v2, %v867_v3  ;;  %v2493_v2 = vld [vmem:[%s3310_s15 + $0x15c] ss:$28 sps:$4 sm:$0xff]  }
 0x2ae   :  { %v2278_v5 = vpop.f32.mrf.mxu0 }
 0x2af   :  { %v873_v6 = vmax.f32 %v868_v4, 0.0  ;;  %v2491_v4 = vld [vmem:[%s3310_s15 + $0x158] ss:$28 sps:$4 sm:$0xff]   ;;  %v2499_v5 = vld [vmem:[%s3310_s15 + $0x124] ss:$28 sps:$4 sm:$0xff]  }
 0x2b0   :  { %v870_v7 = vpop.f32.mrf.mxu0 }
 0x2b1   :  { %v874_v8 = vpack.c.bf16 %v873_v6, %v873_v6  ;;  %v2497_v6 = vld [vmem:[%s3310_s15 + $0x120] ss:$28 sps:$4 sm:$0xff]   ;;  %v2505_v7 = vld [vmem:[%s3310_s15 + $0xec] ss:$28 sps:$4 sm:$0xff]  }
 0x2b2   :  { %v2279_v9 = vpop.f32.mrf.mxu0 }
 0x2b3   :  { %2297 = vmatmul.mubr.bf16.vlgmr.msra.gmra.mxu1 %v874_v8  ;;  %v2503_v8 = vld [vmem:[%s3310_s15 + $0xe8] ss:$28 sps:$4 sm:$0xff]   ;;  %v2511_v9 = vld [vmem:[%s3310_s15 + $0xb4] ss:$28 sps:$4 sm:$0xff]  }
 0x2b4   :  { %2336 = vmatprep.mubr.msk.bf16.mxu1 %vm2622_vm0, %v2621_v44  ;;  %2321 = vmatpush3.bf16.msra.mxu1 %v2466_v11  ;;  %v2517_v11 = vld [vmem:[%s3310_s15 + $0x7c] ss:$28 sps:$4 sm:$0xff]  }
 0x2b5   :  { %2322 = vmatprep.subr.bf16.mxu1 %v2621_v44 }
 0x2b8   :  { %2323 = vmatpush3.bf16.msra.mxu1 %v2467_v12  ;;  %v2515_v12 = vld [vmem:[%s3310_s15 + $0x78] ss:$28 sps:$4 sm:$0xff]  }
 0x2b9   :  { %2324 = vmatprep.subr.bf16.mxu1 %v2621_v44 }
 0x2bc   :  { %2325 = vmatpush3.bf16.msra.mxu1 %v2468_v13  ;;  %v2523_v13 = vld [vmem:[%s3310_s15 + $0x44] ss:$28 sps:$4 sm:$0xff]  }
 0x2bd   :  { %2326 = vmatprep.subr.bf16.mxu1 %v2621_v44 }
 0x2c0   :  { %2327 = vmatpush3.bf16.msra.mxu1 %v2469_v14  ;;  %v2521_v14 = vld [vmem:[%s3310_s15 + $0x40] ss:$28 sps:$4 sm:$0xff]  }
 0x2c1   :  { %2328 = vmatprep.subr.bf16.mxu1 %v2621_v44 }
 0x2c4   :  { %2329 = vmatpush3.bf16.msra.mxu1 %v2470_v15  ;;  %v2526_v15 = vld [vmem:[%s3310_s15 + $0x4] ss:$28 sps:$4 sm:$0xff]  }
 0x2c5   :  { %2330 = vmatprep.subr.bf16.mxu1 %v2621_v44 }
 0x2c8   :  { %2331 = vmatpush3.bf16.msra.mxu1 %v2471_v16  ;;  %v2529_v16 = vld [vmem:[%s3310_s15 + $0xc] ss:$28 sps:$4 sm:$0xff]  }
 0x2c9   :  { %2332 = vmatprep.subr.bf16.mxu1 %v2621_v44 }
 0x2cc   :  { %2333 = vmatpush3.bf16.msra.mxu1 %v2472_v24 }
 0x2cd   :  { %2334 = vmatprep.subr.bf16.mxu1 %v2621_v44 }
 0x2d0   :  { %2335 = vmatpush3.bf16.msra.mxu1 %v2473_v25 }
 0x2d1   :  { %1715 = vmatprep.subr.bf16.mxu1 %v2484_v43  ;;  %v2552_v43 = vld [vmem:[%s3310_s15 + $0x84] ss:$28 sps:$4 sm:$0xff]  }
 0x373   :  { %v980_v18 = vpop.f32.mrf.mxu1 }
 0x374   :  { %v981_v19 = vadd.f32 %v2003_v17, %v980_v18  ;;  %v2524_v17 = vld [vmem:[%s3310_s15] ss:$28 sps:$4 sm:$0xff]   ;;  %v2527_v18 = vld [vmem:[%s3310_s15 + $0x8] ss:$28 sps:$4 sm:$0xff]  }
 0x375   :  { %v2298_v20 = vpop.f32.mrf.mxu1 }
 0x376   :  { %v986_v21 = vpack.c.bf16 %v981_v19, %v981_v19  ;;  %v2532_v19 = vld [vmem:[%s3310_s15 + $0x19c] ss:$28 sps:$4 sm:$0xff]   ;;  %v2623_v20 = vmov 0  }
 0x377   :  { %v983_v22 = vpop.f32.mrf.mxu1 }
 0x378   :  { %2317 = vmatmul.mubr.bf16.vlgmr.msra.gmra.mxu0 %v986_v21  ;;  %v2030_v21 = vld [vmem:[%s3309_s14] ss:$0 sm:$0xff] }
 0x379   :  { %v2299_v23 = vpop.f32.mrf.mxu1  ;;  %2356 = vmatprep.mubr.msk.bf16.mxu0 %vm2622_vm0, %v2621_v44  ;;  %2341 = vmatpush3.bf16.msra.mxu0 %v2474_v26 }
 0x37a   :  { %2342 = vmatprep.subr.bf16.mxu0 %v2621_v44 }
 0x37d   :  { %2343 = vmatpush3.bf16.msra.mxu0 %v2475_v27  ;;  %v2530_v27 = vld [vmem:[%s3310_s15 + $0x198] ss:$28 sps:$4 sm:$0xff]  }
 0x37e   :  { %2344 = vmatprep.subr.bf16.mxu0 %v2621_v44 }
 0x381   :  { %2345 = vmatpush3.bf16.msra.mxu0 %v2476_v28  ;;  %v2533_v28 = vld [vmem:[%s3310_s15 + $0x1a0] ss:$28 sps:$4 sm:$0xff]  }
 0x382   :  { %2346 = vmatprep.subr.bf16.mxu0 %v2621_v44 }
 0x385   :  { %2347 = vmatpush3.bf16.msra.mxu0 %v2477_v29 }
 0x386   :  { %2348 = vmatprep.subr.bf16.mxu0 %v2621_v44 }
 0x389   :  { %2349 = vmatpush3.bf16.msra.mxu0 %v2478_v30  ;;  %v2536_v30 = vld [vmem:[%s3310_s15 + $0x164] ss:$28 sps:$4 sm:$0xff]  }
 0x38a   :  { %2350 = vmatprep.subr.bf16.mxu0 %v2621_v44 }
 0x38d   :  { %2351 = vmatpush3.bf16.msra.mxu0 %v2479_v31 }
 0x38e   :  { %2352 = vmatprep.subr.bf16.mxu0 %v2621_v44 }
 0x391   :  { %2353 = vmatpush3.bf16.msra.mxu0 %v2480_v40  ;;  %v2548_v40 = vld [vmem:[%s3310_s15 + $0xbc] ss:$28 sps:$4 sm:$0xff]  }
 0x392   :  { %2354 = vmatprep.subr.bf16.mxu0 %v2621_v44 }
 0x395   :  { %2355 = vmatpush3.bf16.msra.mxu0 %v2481_v41  ;;  %v2546_v41 = vld [vmem:[%s3310_s15 + $0xb8] ss:$28 sps:$4 sm:$0xff]  }
 0x396   :  { %1756 = vmatprep.subr.bf16.mxu0 %v2487_v45  ;;  %v2550_v45 = vld [vmem:[%s3310_s15 + $0x80] ss:$28 sps:$4 sm:$0xff]  }
 0x438   :  { %v1092_v33 = vpop.f32.mrf.mxu0 }
 0x439   :  { %v1093_v34 = vadd.f32 %v2012_v32, %v1092_v33  ;;  %v2534_v32 = vld [vmem:[%s3310_s15 + $0x160] ss:$28 sps:$4 sm:$0xff]   ;;  %v2537_v33 = vld [vmem:[%s3310_s15 + $0x168] ss:$28 sps:$4 sm:$0xff]  }
 0x43a   :  { %v2318_v35 = vpop.f32.mrf.mxu0 }
 0x43b   :  { %v1098_v36 = vmax.f32 %v1093_v34, 0.0  ;;  %v2540_v34 = vld [vmem:[%s3310_s15 + $0x12c] ss:$28 sps:$4 sm:$0xff]  }
 0x43c   :  { %v1095_v37 = vpop.f32.mrf.mxu0  ;;  %v2538_v35 = vld [vmem:[%s3310_s15 + $0x128] ss:$28 sps:$4 sm:$0xff]  }
 0x43d   :  { %v1099_v38 = vpack.c.bf16 %v1098_v36, %v1098_v36  ;;  %v2541_v36 = vld [vmem:[%s3310_s15 + $0x130] ss:$28 sps:$4 sm:$0xff]  }
 0x43e   :  { %v2319_v39 = vpop.f32.mrf.mxu0  ;;  %v2544_v37 = vld [vmem:[%s3310_s15 + $0xf4] ss:$28 sps:$4 sm:$0xff]  }
 0x43f   :  { %2337 = vmatmul.mubr.bf16.vlgmr.msra.gmra.mxu1 %v1099_v38  ;;  %v2542_v38 = vld [vmem:[%s3310_s15 + $0xf0] ss:$28 sps:$4 sm:$0xff]   ;;  %v2545_v39 = vld [vmem:[%s3310_s15 + $0xf8] ss:$28 sps:$4 sm:$0xff]  }
 0x440   :  { %1716 = vmatpush1.bf16.msra.mxu1 %v2482_v42  ;;  %1747 = vmatprep.mubr.bf16.mxu1 %v2623_v20  ;;  %v2549_v42 = vld [vmem:[%s3310_s15 + $0xc0] ss:$28 sps:$4 sm:$0xff]  }
 0x441   :  { %1717 = vmatprep.subr.bf16.mxu1 %v2490_v46  ;;  %v2553_v46 = vld [vmem:[%s3310_s15 + $0x88] ss:$28 sps:$4 sm:$0xff]  }
 0x444   :  { %1718 = vmatpush1.bf16.msra.mxu1 %v2488_v47  ;;  %v2556_v47 = vld [vmem:[%s3310_s15 + $0x4c] ss:$28 sps:$4 sm:$0xff]  }
 0x445   :  { %1719 = vmatprep.subr.bf16.mxu1 %v2496_v48  ;;  %v2554_v48 = vld [vmem:[%s3310_s15 + $0x48] ss:$28 sps:$4 sm:$0xff]  }
 0x448   :  { %1720 = vmatpush1.bf16.msra.mxu1 %v2494_v49  ;;  %v2557_v49 = vld [vmem:[%s3310_s15 + $0x50] ss:$28 sps:$4 sm:$0xff]  }
 0x449   :  { %1721 = vmatprep.subr.bf16.mxu1 %v2502_v50  ;;  %v2560_v50 = vld [vmem:[%s3310_s15 + $0x14] ss:$28 sps:$4 sm:$0xff]  }
 0x44c   :  { %1722 = vmatpush1.bf16.msra.mxu1 %v2500_v51  ;;  %v2558_v51 = vld [vmem:[%s3310_s15 + $0x10] ss:$28 sps:$4 sm:$0xff]  }
 0x44d   :  { %1723 = vmatprep.subr.bf16.mxu1 %v2508_v52  ;;  %v2561_v52 = vld [vmem:[%s3310_s15 + $0x18] ss:$28 sps:$4 sm:$0xff]   ;;  %s2624_s15 = smov [#allocation5]  }
 0x450   :  { %1724 = vmatpush1.bf16.msra.mxu1 %v2506_v53  ;;  %v1392_v53 = vlaneseq }
 0x451   :  { %1725 = vmatprep.subr.bf16.mxu1 %v2514_v54 }
 0x452   :  { %v1393_v54 = vshrl.u32 %v1392_v53, 7 }
 0x454   :  { %1726 = vmatpush1.bf16.msra.mxu1 %v2512_v55  ;;  %v1394_v55 = vsub.s32 0, %v1393_v54 }
 0x455   :  { %1727 = vmatprep.subr.bf16.mxu1 %v2520_v56  ;;  %v1402_v56 = vsub.s32 2, %v1393_v54 }
 0x458   :  { %1728 = vmatpush1.bf16.msra.mxu1 %v2518_v57  ;;  %v1390_v57 = vld [vmem:[%s3311_s16] sm:$0x7f]  ;;  %s1925_s16 = sshll.u32 %s2624_s15, 4  ;;  %s1926_s16 = int_to_ptr.vmem [resolvable:$true] %s1925_s16 }
 0x459   :  { %1729 = vmatprep.subr.bf16.mxu1 %v2526_v15  ;;  %s2596_s19 = scalar_lea.vmem %s1926_s16, 448  ;;  %p2601_p6 = scmp.lt.s32.totalorder %s1926_s16, %s1926_s16 }
 0x45a   :  { %p2597_p5 = scmp.ne.s32.totalorder %s1926_s16, %s2596_s19  ;;  %p2602_p7 = scmp.lt.s32.totalorder %s2596_s19, %s2596_s19 }
 0x45c   :  { %1730 = vmatpush1.bf16.msra.mxu1 %v2524_v17  ;;  %v1410_v17 = vsub.s32 4, %v1393_v54  ;;  %p2603_p8 = por %p2602_p7, %p2601_p6 }
 0x45d   :  { %1797 = vmatprep.subr.bf16.mxu1 %v2532_v19  ;;  %v1414_v19 = vsub.s32 5, %v1393_v54 }
 0x45e   :  { %p2604_p9 = pnand %p2603_p8, %p2597_p5 }
 0x4ff   :  { %v1205_v59 = vpop.f32.mrf.mxu1 }
 0x500   :  { %v1206_v60 = vadd.f32 %v2021_v58, %v1205_v59  ;;  %v1398_v58 = vsub.s32 1, %v1393_v54  ;;  %v1406_v59 = vsub.s32 3, %v1393_v54 }
 0x501   :  { %v2338_v61 = vpop.f32.mrf.mxu1 }
 0x502   :  { %v1211_v62 = vmax.f32 %v1206_v60, 0.0  ;;  %v1395_v60 = vrot.slane %v1390_v57, %v1394_v55  ;;  %v1403_v61 = vrot.slane %v1390_v57, %v1402_v56 }
 0x503   :  { %v1208_v63 = vpop.f32.mrf.mxu1 }
 0x504   :  { %v1212_v1 = vpack.c.bf16 %v1211_v62, %v1211_v62  ;;  %v1399_v62 = vrot.slane %v1390_v57, %v1398_v58  ;;  %v1407_v63 = vrot.slane %v1390_v57, %v1406_v59 }
 0x505   :  { %v2339_v3 = vpop.f32.mrf.mxu1 }
 0x506   :  { %2357 = vmatmul.mubr.bf16.vlgmr.msra.gmra.mxu0 %v1212_v1 }
 0x507   :  { %1757 = vmatpush1.bf16.msra.mxu0 %v2485_v0  ;;  %1788 = vmatprep.mubr.bf16.mxu0 %v2623_v20 }
 0x508   :  { %1758 = vmatprep.subr.bf16.mxu0 %v2493_v2 }
 0x50b   :  { %1759 = vmatpush1.bf16.msra.mxu0 %v2491_v4 }
 0x50c   :  { %1760 = vmatprep.subr.bf16.mxu0 %v2499_v5 }
 0x50f   :  { %1761 = vmatpush1.bf16.msra.mxu0 %v2497_v6 }
 0x510   :  { %1762 = vmatprep.subr.bf16.mxu0 %v2505_v7 }
 0x513   :  { %1763 = vmatpush1.bf16.msra.mxu0 %v2503_v8 }
 0x514   :  { %1764 = vmatprep.subr.bf16.mxu0 %v2511_v9 }
 0x517   :  { %1765 = vmatpush1.bf16.msra.mxu0 %v2509_v10 }
 0x518   :  { %1766 = vmatprep.subr.bf16.mxu0 %v2517_v11 }
 0x51b   :  { %1767 = vmatpush1.bf16.msra.mxu0 %v2515_v12 }
 0x51c   :  { %1768 = vmatprep.subr.bf16.mxu0 %v2523_v13 }
 0x51f   :  { %1769 = vmatpush1.bf16.msra.mxu0 %v2521_v14 }
 0x520   :  { %1770 = vmatprep.subr.bf16.mxu0 %v2529_v16 }
 0x523   :  { %1771 = vmatpush1.bf16.msra.mxu0 %v2527_v18  ;;  %v1418_v18 = vsub.s32 6, %v1393_v54 }
 0x524   :  { %2360 = vmatprep.subr.bf16.mxu0 %v2621_v44 }
 0x5c6   :  { %v1318_v22 = vpop.f32.mrf.mxu0 }
 0x5c7   :  { %v1319_v23 = vadd.f32 %v2030_v21, %v1318_v22  ;;  %v1419_v21 = vrot.slane %v1390_v57, %v1418_v18  ;;  %v1415_v22 = vrot.slane %v1390_v57, %v1414_v19 }
 0x5c8   :  { %v2358_v24 = vpop.f32.mrf.mxu0 }
 0x5c9   :  { %v1324_v25 = vmax.f32 %v1319_v23, 0.0 }
 0x5ca   :  { %v1321_v26 = vpop.f32.mrf.mxu0 }
 0x5cb   :  { %v1325_v29 = vpack.c.bf16 %v1324_v25, %v1324_v25 }
 0x5cc   :  { %v2359_v31 = vpop.f32.mrf.mxu0 }
 0x5cd   :  { %1748 = vmatmul.mubr.bf16.vlgmr.msra.gmra.mxu1 %v1325_v29  ;;  %1789 = vmatmul.mubr.bf16.vlgmr.msra.gmra.mxu0 %v1325_v29 }
 0x5ce   :  { %1798 = vmatpush1.bf16.msra.mxu1 %v2530_v27  ;;  %2361 = vmatpush3.bf16.msra.mxu0 %v2533_v28 }
 0x5cf   :  { %1799 = vmatprep.subr.bf16.mxu1 %v2536_v30  ;;  %2362 = vmatprep.subr.bf16.mxu0 %v2621_v44 }
 0x5d0   :  { %1829 = vmatprep.mubr.bf16.mxu1 %v2623_v20  ;;  %2376 = vmatprep.mubr.msk.bf16.mxu0 %vm2622_vm0, %v2621_v44  ;;  %v1411_v20 = vrot.slane %v1390_v57, %v1410_v17 }
 0x5d2   :  { %1800 = vmatpush1.bf16.msra.mxu1 %v2534_v32  ;;  %2363 = vmatpush3.bf16.msra.mxu0 %v2537_v33 }
 0x5d3   :  { %1801 = vmatprep.subr.bf16.mxu1 %v2540_v34  ;;  %2364 = vmatprep.subr.bf16.mxu0 %v2621_v44 }
 0x5d6   :  { %1802 = vmatpush1.bf16.msra.mxu1 %v2538_v35  ;;  %2365 = vmatpush3.bf16.msra.mxu0 %v2541_v36 }
 0x5d7   :  { %1803 = vmatprep.subr.bf16.mxu1 %v2544_v37  ;;  %2366 = vmatprep.subr.bf16.mxu0 %v2621_v44 }
 0x5da   :  { %1804 = vmatpush1.bf16.msra.mxu1 %v2542_v38  ;;  %2367 = vmatpush3.bf16.msra.mxu0 %v2545_v39 }
 0x5db   :  { %1805 = vmatprep.subr.bf16.mxu1 %v2548_v40  ;;  %2368 = vmatprep.subr.bf16.mxu0 %v2621_v44 }
 0x5de   :  { %1806 = vmatpush1.bf16.msra.mxu1 %v2546_v41  ;;  %2369 = vmatpush3.bf16.msra.mxu0 %v2549_v42 }
 0x5df   :  { %1807 = vmatprep.subr.bf16.mxu1 %v2552_v43  ;;  %2370 = vmatprep.subr.bf16.mxu0 %v2621_v44 }
 0x5e2   :  { %1808 = vmatpush1.bf16.msra.mxu1 %v2550_v45  ;;  %2371 = vmatpush3.bf16.msra.mxu0 %v2553_v46 }
 0x5e3   :  { %1809 = vmatprep.subr.bf16.mxu1 %v2556_v47  ;;  %2372 = vmatprep.subr.bf16.mxu0 %v2621_v44 }
 0x5e6   :  { %1810 = vmatpush1.bf16.msra.mxu1 %v2554_v48  ;;  %2373 = vmatpush3.bf16.msra.mxu0 %v2557_v49 }
 0x5e7   :  { %1811 = vmatprep.subr.bf16.mxu1 %v2560_v50  ;;  %2374 = vmatprep.subr.bf16.mxu0 %v2621_v44 }
 0x5ea   :  { %1812 = vmatpush1.bf16.msra.mxu1 %v2558_v51  ;;  %2375 = vmatpush3.bf16.msra.mxu0 %v2561_v52 }
 0x5ed   :  { %1830 = vmatmul.mubr.bf16.vlgmr.msra.gmra.mxu1 %v1325_v29  ;;  %2377 = vmatmul.mubr.bf16.vlgmr.msra.gmra.mxu0 %v1325_v29 }
 0x68d   :  { %v1749_v0 = vpop.f32.mrf.mxu1  ;;  %v1790_v44 = vpop.f32.mrf.mxu0 }
 0x68e   :  { %v1750_v1 = vadd.f32 %v1749_v0, %v1395_v60  ;;  %v1791_v2 = vadd.f32 %v1790_v44, %v1403_v61 }
 0x68f   :  { %v1751_v3 = vpop.f32.mrf.mxu1  ;;  %v1792_v4 = vpop.f32.mrf.mxu0 }
 0x690   :  { %2562 = vtanh.f32 %v1750_v1  ;;  %v1752_v5 = vadd.f32 %v1751_v3, %v1399_v62  ;;  %v1793_v6 = vadd.f32 %v1792_v4, %v1407_v63 }
 0x691   :  { %2564 = vtanh.f32 %v1791_v2  ;;  %v1753_v7 = vpop.f32.mrf.mxu1  ;;  %v1794_v8 = vpop.f32.mrf.mxu0 }
 0x692   :  { %2566 = vtanh.f32 %v1752_v5 }
 0x693   :  { %2568 = vtanh.f32 %v1793_v6  ;;  %v1754_v9 = vpop.f32.mrf.mxu1  ;;  %v1795_v10 = vpop.f32.mrf.mxu0 }
 0x69d   :  { %v2563_v11 = vpop.eup %2562 }
 0x69e   :  { %v2565_v12 = vpop.eup %2564 }
 0x69f   :  { %v2567_v13 = vpop.eup %2566 }
 0x6a0   :  { %v2569_v14 = vpop.eup %2568  ;;  %v2099_v15 = vpack.c.bf16 %v2567_v13, %v2563_v11 }
 0x6a1   :  { %v2100_v16 = vpack.c.bf16 %v2569_v14, %v2565_v12 }
 0x6a2   :  { %1914 = vst [vmem:[#allocation5] sm:$0xff] %v2099_v15 }
 0x6a3   :  { %1915 = vst [vmem:[#allocation5 + $0x8] sm:$0xff] %v2100_v16 }
 0x6ad   :  { %v1831_v23 = vpop.f32.mrf.mxu1  ;;  %v1872_v24 = vpop.f32.mrf.mxu0 }
 0x6ae   :  { %v1832_v25 = vadd.f32 %v1831_v23, %v1411_v20  ;;  %v1873_v26 = vadd.f32 %v1872_v24, %v1419_v21 }
 0x6af   :  { %v1833_v27 = vpop.f32.mrf.mxu1  ;;  %v2378_v28 = vpop.f32.mrf.mxu0 }
 0x6b0   :  { %2570 = vtanh.f32 %v1832_v25  ;;  %v1834_v29 = vadd.f32 %v1833_v27, %v1415_v22 }
 0x6b1   :  { %2572 = vtanh.f32 %v1873_v26  ;;  %v1835_v30 = vpop.f32.mrf.mxu1  ;;  %v1875_v31 = vpop.f32.mrf.mxu0 }
 0x6b2   :  { %2574 = vtanh.f32 %v1834_v29 }
 0x6b3   :  { %v1836_v32 = vpop.f32.mrf.mxu1  ;;  %v2379_v33 = vpop.f32.mrf.mxu0 }
 0x6bd   :  { %v2571_v34 = vpop.eup %2570 }
 0x6be   :  { %v2573_v35 = vpop.eup %2572 }
 0x6bf   :  { %v2575_v36 = vpop.eup %2574  ;;  %v2102_v37 = vpack.c.bf16 %v2573_v35, %v2573_v35 }
 0x6c0   :  { %v2101_v38 = vpack.c.bf16 %v2575_v36, %v2571_v34 }
 0x6c1   :  { %1918 = vst.msk [vmem:[#allocation5 + $0x18] sm:$0xf] %vm1917_vm2, %v2102_v37 }
 0x6c2   :  { %1916 = vst [vmem:[#allocation5 + $0x10] sm:$0xff] %v2101_v38 }
 0x6c3   :  { %2607 = shalt.err (!%p2604_p9)
}
 0x6c4   :  { %1928 = dma.vmem_to_hbm [thread:$0]  %s1926_s16, 448, %s3312_s17, [#allocation4]  }
 0x6c5   :  { %2618 = dma.done.wait [#allocation4], 448  }
 0x6c6   :  { %2619 = vsyncadd [#allocation4], 4294966848 }
 0x6c7   :  { %1932 = vsyncpa [#allocation3], 1 }
 0x6c8   :  { %1933 = vsyncpa [#allocation4], 1 }

</bundles_post_ra>
